<compile_context>
chip_gen: v5e
topology: v5e:2x2
jax: 0.10.0
libtpu: 0.0.40
codegen_flags: <defaults>
</compile_context>

<pallas_src>
from functools import partial

import numpy as np
import jax
import jax.numpy as jnp
from jax import lax
from jax.experimental import pallas as pl
from jax.experimental.pallas import tpu as pltpu


# ----------------------------------------------------------------------------
# Pallas kernel: whole forward hot path, single program, all operands in VMEM.
# ----------------------------------------------------------------------------
def a2c_kernel(zf_ref, xy_ref, w1_ref, w2_ref, w3_ref, wxy_ref, wh_ref,
               out_ref, *, n_actions):
    f32 = jnp.float32

    # conv1 (exact dense-matmul form, bias folded into W1 row 36) + ReLU
    h1 = jnp.maximum(
        jnp.dot(zf_ref[...], w1_ref[...], preferred_element_type=f32), 0.0)
    # conv2 (bias folded, constant-1 column carried through) + ReLU
    h2 = jnp.maximum(
        jnp.dot(h1, w2_ref[...], preferred_element_type=f32), 0.0)
    # affine layer with fc pre-composed in, biases folded into the weights
    pre = (jnp.dot(h2, w3_ref[...], preferred_element_type=f32)
           + jnp.dot(xy_ref[...], wxy_ref[...], preferred_element_type=f32))
    out4 = jnp.maximum(pre, 0.0)                      # (Bp, 129), col 128 == 1

    # fused action+value head: cols [0, nA) = action scores, col nA = value
    head = jnp.dot(out4, wh_ref[...], preferred_element_type=f32)  # (Bp, 128)

    # masked, numerically-stable softmax over the first n_actions lanes
    col = lax.broadcasted_iota(jnp.int32, head.shape, 1)
    is_act = col < n_actions
    masked = jnp.where(is_act, head, jnp.float32(-1e30))
    m = jnp.max(masked, axis=-1, keepdims=True)
    e = jnp.exp(masked - m)                           # masked lanes -> exactly 0
    inv = pl.reciprocal(jnp.sum(e, axis=-1, keepdims=True), approx=False)
    probs = e * inv

    # single unmasked lane-dense store: probs in cols [0,nA), value in col nA
    out_ref[...] = probs + jnp.where(col == n_actions, head, 0.0)


# ----------------------------------------------------------------------------
# One-time parameter preparation (exact re-parameterization, no per-call cost).
# ----------------------------------------------------------------------------
def conv3x3_same_to_matmul(w, b, H=3, W=3):
    """Exact dense lowering of Conv2d(kernel=3, padding=1) on an HxW grid.

    Row index = channel-major flatten of the input, col index = channel-major
    flatten of the output (identical to torch's .view(B, -1) convention).
    """
    Cin = w.shape[1]
    eye = jnp.eye(Cin * H * W, dtype=jnp.float32).reshape(Cin * H * W, Cin, H, W)
    out = lax.conv_general_dilated(eye, w, (1, 1), "SAME",
                                   dimension_numbers=("NCHW", "OIHW", "NCHW"))
    M = out.reshape(Cin * H * W, -1)              # (Cin*H*W, Cout*H*W)
    bvec = jnp.repeat(b, H * W).astype(jnp.float32)
    return M, bvec


def prepare_params(params, dx, dy, n_actions, head_width=128):
    f32 = jnp.float32
    w1m, b1v = conv3x3_same_to_matmul(params["conv1_w"], params["conv1_b"])  # (36,72)
    w2m, b2v = conv3x3_same_to_matmul(params["conv2_w"], params["conv2_b"])  # (72,144)

    wfc_t = params["fc_w"].T                      # (144, 9)
    bfc = params["fc_b"]                          # (9,)
    wa = params["affine_w"]                       # (128, dx+dy+9)
    ba = params["affine_b"]                       # (128,)
    wxy = wa[:, :dx + dy].T                       # (dx+dy, 128)
    wao = wa[:, dx + dy:].T                       # (9, 128)
    w_h2 = wfc_t @ wao                            # (144, 128)  fc folded into affine
    b_aff = ba + bfc @ wao                        # (128,)

    wact_t = params["action_w"].T                 # (128, nA)
    bact = params["action_b"]
    wv_t = params["value_w"].T                    # (128, 1)
    bv = params["value_b"]

    D0, D1, D2, Dxy = 36, 72, 144, dx + dy

    # W1: (37, 73) -- cols [0,72)=conv1, row 36 = bias, col 72 = const-1 carrier
    W1 = jnp.zeros((D0 + 1, D1 + 1), f32)
    W1 = W1.at[:D0, :D1].set(w1m).at[D0, :D1].set(b1v).at[D0, D1].set(1.0)
    # W2: (73, 145) -- cols [0,144)=conv2, row 72 = bias, col 144 = carrier
    W2 = jnp.zeros((D1 + 1, D2 + 1), f32)
    W2 = W2.at[:D1, :D2].set(w2m).at[D1, :D2].set(b2v).at[D1, D2].set(1.0)
    # W3: (145, 129) -- h2 -> affine (bias supplied via the xy path), col 128 = carrier
    W3 = jnp.zeros((D2 + 1, 129), f32)
    W3 = W3.at[:D2, :128].set(w_h2).at[D2, 128].set(1.0)
    # Wxy: (dx+dy+1, 129) -- merged x/y weights, last row = effective affine bias
    Wxy = jnp.zeros((Dxy + 1, 129), f32)
    Wxy = Wxy.at[:Dxy, :128].set(wxy).at[Dxy, :128].set(b_aff)
    # Wh: (129, head_width) -- fused action+value head, row 128 = head biases
    Wh = jnp.zeros((129, head_width), f32)
    Wh = Wh.at[:128, :n_actions].set(wact_t).at[128, :n_actions].set(bact)
    Wh = Wh.at[:128, n_actions].set(wv_t[:, 0]).at[128, n_actions].set(bv[0])

    return {"W1": W1, "W2": W2, "W3": W3, "Wxy": Wxy, "Wh": Wh}


# ----------------------------------------------------------------------------
# Jitted forward wrapper.
# ----------------------------------------------------------------------------
@partial(jax.jit, static_argnames=("n_actions",))
def a2c_forward(x, y, z, prep, n_actions):
    B = x.shape[0]
    Bp = max(8, ((B + 7) // 8) * 8)               # pad batch to f32 sublane multiple
    ones = jnp.ones((B, 1), jnp.float32)
    zf_aug = jnp.concatenate([z.reshape(B, -1), ones], axis=1)   # (B, 37)
    xy_aug = jnp.concatenate([x, y, ones], axis=1)               # (B, dx+dy+1)
    pad = Bp - B
    zf_aug = jnp.pad(zf_aug, ((0, pad), (0, 0)))
    xy_aug = jnp.pad(xy_aug, ((0, pad), (0, 0)))

    head_width = prep["Wh"].shape[1]
    vmem = pl.BlockSpec(memory_space=pltpu.MemorySpace.VMEM)
    out = pl.pallas_call(
        partial(a2c_kernel, n_actions=n_actions),
        out_shape=jax.ShapeDtypeStruct((Bp, head_width), jnp.float32),
        in_specs=[vmem] * 7,
        out_specs=vmem,
    )(zf_aug, xy_aug, prep["W1"], prep["W2"], prep["W3"], prep["Wxy"], prep["Wh"])

    probs = out[:B, :n_actions]
    values = out[:B, n_actions:n_actions + 1]
    return probs, values


# ----------------------------------------------------------------------------
# Pure-JAX reference (mirrors the PyTorch module exactly) for verification.
# ----------------------------------------------------------------------------
def a2c_reference(x, y, z, params):
    dn = ("NCHW", "OIHW", "NCHW")
    o = lax.conv_general_dilated(z, params["conv1_w"], (1, 1), "SAME",
                                 dimension_numbers=dn)
    o = jax.nn.relu(o + params["conv1_b"][None, :, None, None])
    o = lax.conv_general_dilated(o, params["conv2_w"], (1, 1), "SAME",
                                 dimension_numbers=dn)
    o = jax.nn.relu(o + params["conv2_b"][None, :, None, None])
    out2 = o.reshape(x.shape[0], -1) @ params["fc_w"].T + params["fc_b"]
    out3 = jnp.concatenate([x, y, out2], axis=1)
    out4 = jax.nn.relu(out3 @ params["affine_w"].T + params["affine_b"])
    scores = out4 @ params["action_w"].T + params["action_b"]
    values = out4 @ params["value_w"].T + params["value_b"]
    return jax.nn.softmax(scores, axis=-1), values


if __name__ == "__main__":
    B = 2
    dx, dy = 4, 3                  # x: (B,4), y: (B,3)
    n_features = dx + dy + 9       # 16  (cat(x, y, out2) with out2 of width 9)
    n_actions = 6

    key = jax.random.PRNGKey(0)
    ks = jax.random.split(key, 16)

    def w(k, shape, scale=0.1):
        return scale * jax.random.normal(k, shape, jnp.float32)

    params = {
        "conv1_w": w(ks[0], (8, 4, 3, 3)),   "conv1_b": w(ks[1], (8,)),
        "conv2_w": w(ks[2], (16, 8, 3, 3)),  "conv2_b": w(ks[3], (16,)),
        "fc_w":    w(ks[4], (9, 144)),       "fc_b":    w(ks[5], (9,)),
        "affine_w": w(ks[6], (128, n_features)), "affine_b": w(ks[7], (128,)),
        "action_w": w(ks[8], (n_actions, 128)),  "action_b": w(ks[9], (n_actions,)),
        "value_w":  w(ks[10], (1, 128)),         "value_b":  w(ks[11], (1,)),
    }

    x = jax.random.normal(ks[12], (B, dx), jnp.float32)
    y = jax.random.normal(ks[13], (B, dy), jnp.float32)
    z = jax.random.normal(ks[14], (B, 4, 3, 3), jnp.float32)   # NCHW

    # One-time parameter preparation (hoisted out of the forward path).
    prep = jax.block_until_ready(prepare_params(params, dx, dy, n_actions))

    probs, values = a2c_forward(x, y, z, prep, n_actions)
    jax.block_until_ready((probs, values))

    ref_probs, ref_values = a2c_reference(x, y, z, params)
    np.testing.assert_allclose(np.asarray(probs), np.asarray(ref_probs),
                               rtol=1e-4, atol=1e-5)
    np.testing.assert_allclose(np.asarray(values), np.asarray(ref_values),
                               rtol=1e-4, atol=1e-5)
    assert probs.shape == (B, n_actions) and values.shape == (B, 1)

    print("KERNEL_OK")
</pallas_src>

<mosaic_0001>
module attributes {stable_mosaic.version = 11 : i64} {
  func.func @a2c_kernel(%arg0: memref<8x37xf32, #tpu.memory_space<vmem>>, %arg1: memref<8x8xf32, #tpu.memory_space<vmem>>, %arg2: memref<37x73xf32, #tpu.memory_space<vmem>>, %arg3: memref<73x145xf32, #tpu.memory_space<vmem>>, %arg4: memref<145x129xf32, #tpu.memory_space<vmem>>, %arg5: memref<8x129xf32, #tpu.memory_space<vmem>>, %arg6: memref<129x128xf32, #tpu.memory_space<vmem>>, %arg7: memref<8x128xf32, #tpu.memory_space<vmem>>) attributes {dimension_semantics = [], scalar_prefetch = 0 : i64, scratch_operands = 0 : i64, tpu.core_type = #tpu.core_type<tc>} {
    %c0 = arith.constant 0 : index
    %c0_0 = arith.constant 0 : index
    %0 = vector.load %arg0[%c0, %c0_0] : memref<8x37xf32, #tpu.memory_space<vmem>>, vector<8x37xf32>
    %c0_1 = arith.constant 0 : index
    %c0_2 = arith.constant 0 : index
    %1 = vector.load %arg2[%c0_1, %c0_2] : memref<37x73xf32, #tpu.memory_space<vmem>>, vector<37x73xf32>
    %cst = arith.constant dense<0.000000e+00> : vector<8x73xf32>
    %2 = tpu.matmul %0, %1, %cst {dimension_numbers = #tpu.dot_dimension_numbers<[1], [0], [0], [1], [0, 0, 1, 1], [], []>} : vector<8x37xf32>, vector<37x73xf32>, vector<8x73xf32> -> vector<8x73xf32>
    %cst_3 = arith.constant 0.000000e+00 : f32
    %3 = vector.broadcast %cst_3 : f32 to vector<8x73xf32>
    %4 = arith.maximumf %2, %3 : vector<8x73xf32>
    %c0_4 = arith.constant 0 : index
    %c0_5 = arith.constant 0 : index
    %5 = vector.load %arg3[%c0_4, %c0_5] : memref<73x145xf32, #tpu.memory_space<vmem>>, vector<73x145xf32>
    %cst_6 = arith.constant dense<0.000000e+00> : vector<8x145xf32>
    %6 = tpu.matmul %4, %5, %cst_6 {dimension_numbers = #tpu.dot_dimension_numbers<[1], [0], [0], [1], [0, 0, 1, 1], [], []>} : vector<8x73xf32>, vector<73x145xf32>, vector<8x145xf32> -> vector<8x145xf32>
    %cst_7 = arith.constant 0.000000e+00 : f32
    %7 = vector.broadcast %cst_7 : f32 to vector<8x145xf32>
    %8 = arith.maximumf %6, %7 : vector<8x145xf32>
    %c0_8 = arith.constant 0 : index
    %c0_9 = arith.constant 0 : index
    %9 = vector.load %arg4[%c0_8, %c0_9] : memref<145x129xf32, #tpu.memory_space<vmem>>, vector<145x129xf32>
    %cst_10 = arith.constant dense<0.000000e+00> : vector<8x129xf32>
    %10 = tpu.matmul %8, %9, %cst_10 {dimension_numbers = #tpu.dot_dimension_numbers<[1], [0], [0], [1], [0, 0, 1, 1], [], []>} : vector<8x145xf32>, vector<145x129xf32>, vector<8x129xf32> -> vector<8x129xf32>
    %c0_11 = arith.constant 0 : index
    %c0_12 = arith.constant 0 : index
    %11 = vector.load %arg1[%c0_11, %c0_12] : memref<8x8xf32, #tpu.memory_space<vmem>>, vector<8x8xf32>
    %c0_13 = arith.constant 0 : index
    %c0_14 = arith.constant 0 : index
    %12 = vector.load %arg5[%c0_13, %c0_14] : memref<8x129xf32, #tpu.memory_space<vmem>>, vector<8x129xf32>
    %cst_15 = arith.constant dense<0.000000e+00> : vector<8x129xf32>
    %13 = tpu.matmul %11, %12, %cst_15 {dimension_numbers = #tpu.dot_dimension_numbers<[1], [0], [0], [1], [0, 0, 1, 1], [], []>} : vector<8x8xf32>, vector<8x129xf32>, vector<8x129xf32> -> vector<8x129xf32>
    %14 = arith.addf %10, %13 : vector<8x129xf32>
    %cst_16 = arith.constant 0.000000e+00 : f32
    %15 = vector.broadcast %cst_16 : f32 to vector<8x129xf32>
    %16 = arith.maximumf %14, %15 : vector<8x129xf32>
    %c0_17 = arith.constant 0 : index
    %c0_18 = arith.constant 0 : index
    %17 = vector.load %arg6[%c0_17, %c0_18] : memref<129x128xf32, #tpu.memory_space<vmem>>, vector<129x128xf32>
    %cst_19 = arith.constant dense<0.000000e+00> : vector<8x128xf32>
    %18 = tpu.matmul %16, %17, %cst_19 {dimension_numbers = #tpu.dot_dimension_numbers<[1], [0], [0], [1], [0, 0, 1, 1], [], []>} : vector<8x129xf32>, vector<129x128xf32>, vector<8x128xf32> -> vector<8x128xf32>
    %19 = tpu.iota {dimensions = array<i32: 1>} : vector<8x128xi32>
    %c6_i32 = arith.constant 6 : i32
    %20 = vector.broadcast %c6_i32 : i32 to vector<8x128xi32>
    %21 = arith.cmpi slt, %19, %20 : vector<8x128xi32>
    %cst_20 = arith.constant -1.000000e+30 : f32
    %22 = vector.broadcast %cst_20 : f32 to vector<8x128xf32>
    %23 = arith.select %21, %18, %22 : vector<8x128xi1>, vector<8x128xf32>
    %cst_21 = arith.constant dense<0xFF800000> : vector<8xf32>
    %24 = vector.multi_reduction <maximumf>, %23, %cst_21 [1] : vector<8x128xf32> to vector<8xf32>
    %25 = vector.shape_cast %24 : vector<8xf32> to vector<8x1xf32>
    %26 = vector.broadcast %25 : vector<8x1xf32> to vector<8x128xf32>
    %27 = arith.subf %23, %26 : vector<8x128xf32>
    %28 = math.exp %27 : vector<8x128xf32>
    %cst_22 = arith.constant dense<0.000000e+00> : vector<8xf32>
    %29 = vector.multi_reduction <add>, %28, %cst_22 [1] : vector<8x128xf32> to vector<8xf32>
    %30 = vector.shape_cast %29 : vector<8xf32> to vector<8x1xf32>
    %31 = tpu.reciprocal %30 : vector<8x1xf32> -> vector<8x1xf32>
    %32 = vector.broadcast %31 : vector<8x1xf32> to vector<8x128xf32>
    %33 = arith.mulf %28, %32 : vector<8x128xf32>
    %c6_i32_23 = arith.constant 6 : i32
    %34 = vector.broadcast %c6_i32_23 : i32 to vector<8x128xi32>
    %35 = arith.cmpi eq, %19, %34 : vector<8x128xi32>
    %cst_24 = arith.constant 0.000000e+00 : f32
    %36 = vector.broadcast %cst_24 : f32 to vector<8x128xf32>
    %37 = arith.select %35, %18, %36 : vector<8x128xi1>, vector<8x128xf32>
    %38 = arith.addf %33, %37 : vector<8x128xf32>
    %c0_25 = arith.constant 0 : index
    %c0_26 = arith.constant 0 : index
    %39 = vector.load %arg7[%c0_25, %c0_26] : memref<8x128xf32, #tpu.memory_space<vmem>>, vector<8x128xf32>
    tpu.vector_store %arg7[%c0_25, %c0_26], %38 {strides = array<i32>} : memref<8x128xf32, #tpu.memory_space<vmem>>, vector<8x128xf32>,
    return
  }
}

</mosaic_0001>

<bundles_post_ra>
// kernel: a2c_forward.1
= control target key start
LH: loop header
LB: loop body
LE: loop exit
PB: predicated region body
PF: predicated region fallthrough
CT: control target
= control target key end

     0   :  { %vm36_vm0 = vcmask 1044480   ;;  %vm85_vm1 = vcmask 1040384   ;;  %vm32_vm2 = vcmask 302080   ;;  %vm175_vm3 = vcmask 64512   ;;  %s729_s2 = inlined_call_operand.vmem [shape: f32[37,73], index: 2, kind: input, shape index: {}]   ;;  %s730_s3 = inlined_call_operand.vmem [shape: f32[73,145], index: 3, kind: input, shape index: {}]   ;;  %s731_s0 = inlined_call_operand.vmem [shape: f32[8,37], index: 0, kind: input, shape index: {}]   ;;  %s732_s4 = inlined_call_operand.vmem [shape: f32[145,129], index: 4, kind: input, shape index: {}]   ;;  %s733_s5 = inlined_call_operand.vmem [shape: f32[8,129], index: 5, kind: input, shape index: {}]   ;;  %s734_s1 = inlined_call_operand.vmem [shape: f32[8,8], index: 1, kind: input, shape index: {}]   ;;  %s735_s6 = inlined_call_operand.vmem [shape: f32[129,128], index: 6, kind: input, shape index: {}]   ;;  %s736_s7 = inlined_call_operand.vmem [shape: f32[8,128], index: 7, kind: output, shape index: {}]  }
   0x1   :  { %v31_v0 = vld [vmem:[%s729_s2 + $0x20] sm:$0x1f]  ;;  %v30_v1 = vld [vmem:[%s729_s2 + $0x18] sm:$0xff]  ;;  %v29_v2 = vld [vmem:[%s729_s2 + $0x10] sm:$0xff]  ;;  %vm81_vm4 = vcmask 596992   ;;  %vm219_vm5 = vcmask 138240  }
   0x2   :  { %409 = vmatpush.msk.msra.mxu0 %vm36_vm0, %v31_v0  ;;  %v79_v3 = vld [vmem:[%s730_s3 + $0x90] sm:$0x1]  ;;  %v80_v4 = vld [vmem:[%s730_s3 + $0x98] sm:$0x1]  ;;  %v77_v5 = vld [vmem:[%s730_s3 + $0x80] sm:$0xff]  ;;  %vm328_vm6 = vcmask 7168  }
   0x3   :  { %411 = vmatpush.msk.msra.mxu1 %vm85_vm1, %v79_v3  ;;  %v78_v6 = vld [vmem:[%s730_s3 + $0x88] sm:$0xff]  ;;  %413 = vmatpush.msk.msra.mxu2 %vm85_vm1, %v80_v4  ;;  %v75_v8 = vld [vmem:[%s730_s3 + $0x70] sm:$0xff]  ;;  %v76_v9 = vld [vmem:[%s730_s3 + $0x78] sm:$0xff] }
   0x4   :  { %52 = vmatpush.msra.mxu0 %v30_v1  ;;  %v28_v7 = vld [vmem:[%s729_s2 + $0x8] sm:$0xff]  ;;  %v27_v10 = vld [vmem:[%s729_s2] sm:$0xff]  ;;  %v71_v14 = vld [vmem:[%s730_s3 + $0x50] sm:$0xff] }
   0x5   :  { %99 = vmatpush.msra.mxu1 %v77_v5  ;;  %119 = vmatpush.msra.mxu2 %v78_v6  ;;  %v73_v11 = vld [vmem:[%s730_s3 + $0x60] sm:$0xff]  ;;  %v74_v13 = vld [vmem:[%s730_s3 + $0x68] sm:$0xff]  ;;  %v72_v15 = vld [vmem:[%s730_s3 + $0x58] sm:$0xff] }
   0x6   :  { %53 = vmatpush.msra.mxu0 %v29_v2  ;;  %v26_v12 = vld [vmem:[%s731_s0] sm:$0xff]  ;;  %v70_v17 = vld [vmem:[%s730_s3 + $0x48] sm:$0xff]  ;;  %v67_v18 = vld [vmem:[%s730_s3 + $0x30] sm:$0xff] }
   0x7   :  { %100 = vmatpush.msra.mxu1 %v75_v8  ;;  %120 = vmatpush.msra.mxu2 %v76_v9  ;;  %v69_v16 = vld [vmem:[%s730_s3 + $0x40] sm:$0xff]  ;;  %v68_v19 = vld [vmem:[%s730_s3 + $0x38] sm:$0xff]  ;;  %v66_v21 = vld [vmem:[%s730_s3 + $0x28] sm:$0xff] }
   0x8   :  { %54 = vmatpush.msra.mxu0 %v28_v7  ;;  %v65_v20 = vld [vmem:[%s730_s3 + $0x20] sm:$0xff]  ;;  %v63_v22 = vld [vmem:[%s730_s3 + $0x10] sm:$0xff]  ;;  %v64_v23 = vld [vmem:[%s730_s3 + $0x18] sm:$0xff] }
   0x9   :  { %101 = vmatpush.msra.mxu1 %v73_v11  ;;  %121 = vmatpush.msra.mxu2 %v74_v13  ;;  %v61_v24 = vld [vmem:[%s730_s3] sm:$0xff]  ;;  %v62_v25 = vld [vmem:[%s730_s3 + $0x8] sm:$0xff]  ;;  %v164_v26 = vld [vmem:[%s732_s4 + $0xf0] sm:$0xff] }
   0xa   :  { %55 = vmatpush.msra.mxu0 %v27_v10  ;;  %v162_v27 = vld [vmem:[%s732_s4 + $0xe0] sm:$0xff]  ;;  %v174_v30 = vld [vmem:[%s733_s5 + $0x8] sm:$0xff]  ;;  %v160_v31 = vld [vmem:[%s732_s4 + $0xd0] sm:$0xff] }
   0xb   :  { %410 = vmatmul.msk.f32.vlgmr.msra.gmra.mxu0 %vm32_vm2, %v26_v12  ;;  %102 = vmatpush.msra.mxu1 %v71_v14  ;;  %v173_v28 = vld [vmem:[%s733_s5] sm:$0xff]  ;;  %v168_v34 = vld [vmem:[%s732_s4 + $0x110] sm:$0xff]  ;;  %v165_v38 = vld [vmem:[%s732_s4 + $0xf8] sm:$0xff] }
   0xc   :  { %122 = vmatpush.msra.mxu2 %v72_v15  ;;  %229 = vmatpush.msrb.mxu0 %v164_v26  ;;  %v172_v29 = vld [vmem:[%s734_s1] sm:$0xff]  ;;  %v156_v35 = vld [vmem:[%s732_s4 + $0xb0] sm:$0xff]  ;;  %v163_v40 = vld [vmem:[%s732_s4 + $0xe8] sm:$0xff] }
   0xd   :  { %103 = vmatpush.msra.mxu1 %v69_v16  ;;  %194 = vmatpush.msra.mxu3 %v173_v28  ;;  %v170_v32 = vld [vmem:[%s732_s4 + $0x120] sm:$0x1]  ;;  %v152_v39 = vld [vmem:[%s732_s4 + $0x90] sm:$0xff]  ;;  %v161_v42 = vld [vmem:[%s732_s4 + $0xd8] sm:$0xff] }
   0xe   :  { %123 = vmatpush.msra.mxu2 %v70_v17  ;;  %230 = vmatpush.msrb.mxu0 %v162_v27  ;;  %v158_v33 = vld [vmem:[%s732_s4 + $0xc0] sm:$0xff]  ;;  %v148_v43 = vld [vmem:[%s732_s4 + $0x70] sm:$0xff]  ;;  %v159_v44 = vld [vmem:[%s732_s4 + $0xc8] sm:$0xff] }
   0xf   :  { %104 = vmatpush.msra.mxu1 %v67_v18  ;;  %415 = vmatmul.msk.f32.vlgmr.msra.gmra.mxu3 %vm175_vm3, %v172_v29  ;;  %v166_v36 = vld [vmem:[%s732_s4 + $0x100] sm:$0xff]  ;;  %v157_v46 = vld [vmem:[%s732_s4 + $0xb8] sm:$0xff]  ;;  %v144_v47 = vld [vmem:[%s732_s4 + $0x50] sm:$0xff] }
  0x10   :  { %124 = vmatpush.msra.mxu2 %v68_v19  ;;  %214 = vmatpush.msrb.mxu3 %v174_v30  ;;  %v154_v37 = vld [vmem:[%s732_s4 + $0xa0] sm:$0xff]  ;;  %v155_v48 = vld [vmem:[%s732_s4 + $0xa8] sm:$0xff]  ;;  %v153_v50 = vld [vmem:[%s732_s4 + $0x98] sm:$0xff] }
  0x11   :  { %105 = vmatpush.msra.mxu1 %v65_v20  ;;  %231 = vmatpush.msrb.mxu0 %v160_v31  ;;  %v150_v41 = vld [vmem:[%s732_s4 + $0x80] sm:$0xff]  ;;  %v140_v51 = vld [vmem:[%s732_s4 + $0x30] sm:$0xff]  ;;  %v151_v56 = vld [vmem:[%s732_s4 + $0x88] sm:$0xff] }
  0x12   :  { %125 = vmatpush.msra.mxu2 %v66_v21  ;;  %417 = vmatpush.msk.msra.mxu3 %vm85_vm1, %v170_v32  ;;  %v146_v45 = vld [vmem:[%s732_s4 + $0x60] sm:$0xff]  ;;  %v136_v55 = vld [vmem:[%s732_s4 + $0x10] sm:$0xff]  ;;  %v149_v58 = vld [vmem:[%s732_s4 + $0x78] sm:$0xff] }
  0x13   :  { %106 = vmatpush.msra.mxu1 %v63_v22  ;;  %232 = vmatpush.msrb.mxu0 %v158_v33  ;;  %v142_v49 = vld [vmem:[%s732_s4 + $0x40] sm:$0xff]  ;;  %v147_v59 = vld [vmem:[%s732_s4 + $0x68] sm:$0xff]  ;;  %v145_v61 = vld [vmem:[%s732_s4 + $0x58] sm:$0xff] }
  0x14   :  { %126 = vmatpush.msra.mxu2 %v64_v23  ;;  %263 = vmatpush.msra.mxu3 %v168_v34  ;;  %v138_v52 = vld [vmem:[%s732_s4 + $0x20] sm:$0xff]  ;;  %v171_v60 = vld [vmem:[%s732_s4 + $0x128] sm:$0x1]  ;;  %v169_v62 = vld [vmem:[%s732_s4 + $0x118] sm:$0xff] }
  0x15   :  { %107 = vmatpush.msra.mxu1 %v61_v24  ;;  %233 = vmatpush.msrb.mxu0 %v156_v35  ;;  %v134_v57 = vld [vmem:[%s732_s4] sm:$0xff]  ;;  %v143_v63 = vld [vmem:[%s732_s4 + $0x48] sm:$0xff]  ;;  %v141_v1 = vld [vmem:[%s732_s4 + $0x38] sm:$0xff] }
  0x16   :  { %127 = vmatpush.msra.mxu2 %v62_v25  ;;  %264 = vmatpush.msra.mxu3 %v166_v36  ;;  %v167_v0 = vld [vmem:[%s732_s4 + $0x108] sm:$0xff]  ;;  %v137_v3 = vld [vmem:[%s732_s4 + $0x18] sm:$0xff]  ;;  %v325_v6 = vld [vmem:[%s735_s6 + $0x70] sm:$0xff] }
  0x17   :  { %234 = vmatpush.msrb.mxu0 %v154_v37  ;;  %416 = vmatmul.msk.f32.vlgmr.msrb.gmra.mxu3 %vm175_vm3, %v172_v29  ;;  %v139_v2 = vld [vmem:[%s732_s4 + $0x28] sm:$0xff]  ;;  %v326_v5 = vld [vmem:[%s735_s6 + $0x78] sm:$0xff]  ;;  %v323_v8 = vld [vmem:[%s735_s6 + $0x60] sm:$0xff] }
  0x18   :  { %269 = vmatpush.msrb.mxu3 %v165_v38  ;;  %419 = vmatpush.msk.msrb.mxu1 %vm85_vm1, %v171_v60  ;;  %v135_v4 = vld [vmem:[%s732_s4 + $0x8] sm:$0xff]  ;;  %v322_v9 = vld [vmem:[%s735_s6 + $0x58] sm:$0xff]  ;;  %v321_v10 = vld [vmem:[%s735_s6 + $0x50] sm:$0xff]  ;;  %v375_v38 = vlaneseq }
  0x19   :  { %235 = vmatpush.msrb.mxu0 %v152_v39  ;;  %335 = vmatpush.msrb.mxu2 %v326_v5  ;;  %v324_v7 = vld [vmem:[%s735_s6 + $0x68] sm:$0xff]  ;;  %v319_v16 = vld [vmem:[%s735_s6 + $0x40] sm:$0xff]  ;;  %v318_v17 = vld [vmem:[%s735_s6 + $0x38] sm:$0xff] }
  0x1a   :  { %270 = vmatpush.msrb.mxu3 %v163_v40  ;;  %303 = vmatpush.msrb.mxu1 %v169_v62  ;;  %v320_v11 = vld [vmem:[%s735_s6 + $0x48] sm:$0xff]  ;;  %v317_v18 = vld [vmem:[%s735_s6 + $0x30] sm:$0xff]  ;;  %v315_v20 = vld [vmem:[%s735_s6 + $0x20] sm:$0xff]  ;;  %v376_v39 = vand.u32 127, %v375_v38 }
  0x1b   :  { %236 = vmatpush.msrb.mxu0 %v150_v41  ;;  %336 = vmatpush.msrb.mxu2 %v325_v6  ;;  %v316_v19 = vld [vmem:[%s735_s6 + $0x28] sm:$0xff]  ;;  %v314_v21 = vld [vmem:[%s735_s6 + $0x18] sm:$0xff]  ;;  %v313_v22 = vld [vmem:[%s735_s6 + $0x10] sm:$0xff] }
  0x1c   :  { %271 = vmatpush.msrb.mxu3 %v161_v42  ;;  %304 = vmatpush.msrb.mxu1 %v167_v0  ;;  %v312_v23 = vld [vmem:[%s735_s6 + $0x8] sm:$0xff]  ;;  %v311_v24 = vld [vmem:[%s735_s6] sm:$0xff]  ;;  %vm401_vm7 = vcmp.eq.s32.totalorder %v376_v39, 6  ;;  %vm377_vm8 = vcmp.lt.s32.totalorder %v376_v39, 6 }
  0x1d   :  { %237 = vmatpush.msrb.mxu0 %v148_v43  ;;  %337 = vmatpush.msrb.mxu2 %v324_v7  ;;  %v327_v25 = vld [vmem:[%s735_s6 + $0x80] sm:$0x1] }
  0x1e   :  { %272 = vmatpush.msrb.mxu3 %v159_v44 }
  0x1f   :  { %238 = vmatpush.msrb.mxu0 %v146_v45  ;;  %338 = vmatpush.msrb.mxu2 %v323_v8 }
  0x20   :  { %273 = vmatpush.msrb.mxu3 %v157_v46 }
  0x21   :  { %239 = vmatpush.msrb.mxu0 %v144_v47  ;;  %339 = vmatpush.msrb.mxu2 %v322_v9 }
  0x22   :  { %274 = vmatpush.msrb.mxu3 %v155_v48 }
  0x23   :  { %240 = vmatpush.msrb.mxu0 %v142_v49  ;;  %340 = vmatpush.msrb.mxu2 %v321_v10 }
  0x24   :  { %275 = vmatpush.msrb.mxu3 %v153_v50 }
  0x25   :  { %241 = vmatpush.msrb.mxu0 %v140_v51  ;;  %341 = vmatpush.msrb.mxu2 %v320_v11 }
  0x26   :  { %276 = vmatpush.msrb.mxu3 %v151_v56 }
  0x27   :  { %242 = vmatpush.msrb.mxu0 %v138_v52  ;;  %342 = vmatpush.msrb.mxu2 %v319_v16 }
  0x28   :  { %277 = vmatpush.msrb.mxu3 %v149_v58 }
  0x29   :  { %243 = vmatpush.msrb.mxu0 %v136_v55  ;;  %343 = vmatpush.msrb.mxu2 %v318_v17 }
  0x2a   :  { %278 = vmatpush.msrb.mxu3 %v147_v59 }
  0x2b   :  { %244 = vmatpush.msrb.mxu0 %v134_v57  ;;  %344 = vmatpush.msrb.mxu2 %v317_v18 }
  0x2c   :  { %279 = vmatpush.msrb.mxu3 %v145_v61 }
  0x2d   :  { %345 = vmatpush.msrb.mxu2 %v316_v19 }
  0x2e   :  { %280 = vmatpush.msrb.mxu3 %v143_v63 }
  0x2f   :  { %346 = vmatpush.msrb.mxu2 %v315_v20 }
  0x30   :  { %281 = vmatpush.msrb.mxu3 %v141_v1 }
  0x31   :  { %347 = vmatpush.msrb.mxu2 %v314_v21 }
  0x32   :  { %282 = vmatpush.msrb.mxu3 %v139_v2 }
  0x33   :  { %348 = vmatpush.msrb.mxu2 %v313_v22 }
  0x34   :  { %283 = vmatpush.msrb.mxu3 %v137_v3 }
  0x35   :  { %349 = vmatpush.msrb.mxu2 %v312_v23 }
  0x36   :  { %284 = vmatpush.msrb.mxu3 %v135_v4 }
  0x37   :  { %350 = vmatpush.msrb.mxu2 %v311_v24 }
  0x88   :  { %v57_v53 = vpop.f32.mrf.mxu0 }
  0x89   :  { %v60_v54 = vmax.f32 %v57_v53, 0.0 }
  0x8b   :  { %412 = vmatmul.msk.f32.vlgmr.msra.gmra.mxu1 %vm81_vm4, %v60_v54  ;;  %414 = vmatmul.msk.f32.vlgmr.msra.gmra.mxu2 %vm81_vm4, %v60_v54 }
  0x8c   :  { %421 = vmatpush.msk.msra.mxu1 %vm85_vm1, %v327_v25 }
  0x92   :  { %v196_v26 = vpop.f32.mrf.mxu3 }
  0x9a   :  { %v216_v27 = vpop.f32.mrf.mxu3 }
 0x108   :  { %v109_v12 = vpop.f32.mrf.mxu1 }
 0x109   :  { %v132_v13 = vmax.f32 %v109_v12, 0.0 }
 0x10b   :  { %245 = vmatmul.f32.vlgmr.msrb.gmra.mxu0 %v132_v13 }
 0x10e   :  { %v129_v14 = vpop.f32.mrf.mxu2 }
 0x10f   :  { %v133_v15 = vmax.f32 %v129_v14, 0.0 }
 0x111   :  { %418 = vmatmul.msk.f32.vlgmr.msra.gmra.mxu3 %vm219_vm5, %v133_v15  ;;  %420 = vmatmul.msk.f32.vlgmr.msrb.gmra.mxu1 %vm219_vm5, %v133_v15 }
 0x119   :  { %285 = vmatmul.f32.vlgmr.msrb.gmra.mxu3 %v132_v13 }
 0x188   :  { %v246_v28 = vpop.f32.mrf.mxu0 }
 0x189   :  { %v247_v29 = vadd.f32 %v246_v28, %v196_v26 }
 0x18e   :  { %v306_v35 = vpop.f32.mrf.mxu1 }
 0x194   :  { %v266_v30 = vpop.f32.mrf.mxu3 }
 0x195   :  { %v267_v31 = vadd.f32 %v266_v30, %v247_v29 }
 0x197   :  { %v309_v32 = vmax.f32 %v267_v31, 0.0 }
 0x199   :  { %351 = vmatmul.f32.vlgmr.msrb.gmra.mxu2 %v309_v32 }
 0x19c   :  { %v286_v33 = vpop.f32.mrf.mxu3 }
 0x19d   :  { %v287_v34 = vadd.f32 %v286_v33, %v216_v27 }
 0x19f   :  { %v307_v36 = vadd.f32 %v306_v35, %v287_v34 }
 0x1a1   :  { %v310_v37 = vmax.f32 %v307_v36, 0.0 }
 0x1a3   :  { %422 = vmatmul.msk.f32.vlgmr.msra.gmra.mxu1 %vm328_vm6, %v310_v37 }
 0x21c   :  { %v352_v40 = vpop.f32.mrf.mxu2 }
 0x220   :  { %v372_v41 = vpop.f32.mrf.mxu1 }
 0x221   :  { %v373_v42 = vadd.f32 %v372_v41, %v352_v40 }
 0x223   :  { %v402_v43 = vsel %vm401_vm7, %v373_v42, 0.0  ;;  %v378_v44 = vsel %vm377_vm8, %v373_v42, -1e+30 }
 0x224   :  { %379 = vmax.xlane.f32.xlu0 %v378_v44 }
 0x297   :  { %v380_v45 = vpop.xlane.xlu0 %379 }
 0x298   :  { %v381_v46 = vsub.f32 %v378_v44, %v380_v45 }
 0x29a   :  { %v382_v47 = vmul.f32 1.442695, %v381_v46 }
 0x29c   :  { %423 = vpow2.f32 %v382_v47 }
 0x2a2   :  { %v424_v48 = vpop.eup %423 }
 0x2a3   :  { %384 = vadd.xlane.f32.xlu0 %v424_v48 }
 0x316   :  { %v385_v49 = vpop.xlane.xlu0 %384 }
 0x317   :  { %425 = vrcp.f32 %v385_v49  ;;  %v397_v53 = vand.u32 2147483648, %v385_v49  ;;  %v395_v55 = vand.u32 2147483647, %v385_v49  ;;  %vm391_vm10 = vweird.f32 %v385_v49 }
 0x319   :  { %v398_v57 = vor.u32 1.1754944e-38, %v397_v53  ;;  %vm396_vm12 = vcmp.eq.f32.partialorder %v395_v55, 8.507059e+37 }
 0x31d   :  { %v426_v50 = vpop.eup %425 }
 0x31e   :  { %v387_v51 = vmul.f32 %v426_v50, %v385_v49  ;;  %vm392_vm9 = vweird.f32 %v426_v50 }
 0x31f   :  { %vm393_vm11 = vmor %vm391_vm10, %vm392_vm9 }
 0x320   :  { %v388_v52 = vsub.f32 1.0, %v387_v51 }
 0x322   :  { %v389_v54 = vmul.f32 %v426_v50, %v388_v52 }
 0x324   :  { %v390_v56 = vadd.f32 %v426_v50, %v389_v54 }
 0x326   :  { %v394_v58 = vsel %vm393_vm11, %v426_v50, %v390_v56 }
 0x327   :  { %v399_v59 = vsel %vm396_vm12, %v398_v57, %v394_v58 }
 0x328   :  { %v400_v60 = vmul.f32 %v424_v48, %v399_v59 }
 0x32a   :  { %v403_v61 = vadd.f32 %v402_v43, %v400_v60 }
 0x32c   :  { %404 = vst [vmem:[%s736_s7] sm:$0xff] %v403_v61 }

</bundles_post_ra>
